<compile_context>
chip_gen: v5e
topology: v5e:2x2
jax: 0.10.0
libtpu: 0.0.40
codegen_flags: <defaults>
</compile_context>

<pallas_src>
import functools
import re

import jax
import jax.numpy as jnp
from jax.experimental import pallas as pl
from jax.experimental.pallas import tpu as pltpu


# ----------------------------------------------------------------------------
# Kernel body
# ----------------------------------------------------------------------------
def _qrmsnorm_kernel(*refs, eps, has_weight):
    if has_weight:
        x_ref, w_ref, o_ref = refs
    else:
        x_ref, o_ref = refs
        w_ref = None

    x = x_ref[...]
    xf = x.astype(jnp.float32)                       # x.float()
    ms = jnp.mean(xf * xf, axis=-1, keepdims=True)   # x.pow(2).mean(-1, keepdim)
    rms_scale = jax.lax.rsqrt(ms + eps)              # rsqrt -> EUP (free slot)
    normed = (xf * rms_scale).astype(x.dtype)        # .type_as(x)
    if has_weight:
        out = normed * w_ref[...]                    # x.dtype * f32 (torch promote)
    else:
        out = normed
    o_ref[...] = out.astype(o_ref.dtype)


# ----------------------------------------------------------------------------
# Hardware-aware sizing helpers
# ----------------------------------------------------------------------------
def _detect_tpu():
    """Best-effort (generation:int, vmem_capacity_bytes:int). Never raises."""
    gen = 0
    try:
        kind = jax.devices()[0].device_kind.lower()
        m = re.search(r"v(\d+)", kind)
        if m:
            gen = int(m.group(1))
    except Exception:
        pass

    vmem = 0
    try:
        info = pltpu.get_tpu_info()
        vmem = int(getattr(info, "vmem_capacity_bytes", 0) or 0)
    except Exception:
        vmem = 0
    if vmem <= 0:
        vmem = (64 if gen >= 7 else 128) * 1024 * 1024
    return gen, vmem


def _vmem_budget_and_limit(gen, vmem_capacity_bytes):
    if gen >= 7:
        # 64 MiB / TC physical: keep scoped request <= ~48 MiB and size tiles
        # against a ~22 MiB budget so the compiler has slack for temporaries.
        limit = min(48 * 1024 * 1024, (vmem_capacity_bytes * 3) // 4)
        budget = min(22 * 1024 * 1024, limit // 2)
    else:
        # v5e / v6e: 128 MiB physical; ~96 MiB scoped is safe.
        limit = min(96 * 1024 * 1024, (vmem_capacity_bytes * 3) // 4)
        budget = limit // 2
    return budget, limit


def _sublane_multiple(dtype):
    itemsize = jnp.dtype(dtype).itemsize
    return {4: 8, 2: 16, 1: 32}.get(itemsize, 8)


def _row_tile_cap(gen, dim):
    if gen >= 7:
        # 3.2 TB/s -> very short steps; amortize the ~0.35us/step overhead.
        return 4096 if dim <= 2048 else 1024
    if gen == 6:
        return 1024      # measured: ~86% of roofline at 1024-row tiles
    return 512           # v5e (and unknown): roofline already hit by ~512


def _pick_tile_rows(rows, dim, x_dtype, out_dtype, vmem_budget_bytes, gen):
    """Largest sublane-aligned row tile fitting the VMEM budget."""
    x_b = jnp.dtype(x_dtype).itemsize
    o_b = jnp.dtype(out_dtype).itemsize
    # Double-buffered in/out tiles, plus f32 intermediates (xf, xf*xf, normed,
    # promoted product) that can't all live in 64 vregs at these tile sizes.
    n_f32_temps = 4 if gen >= 7 else 3
    per_row = dim * (2 * (x_b + o_b) + n_f32_temps * 4)
    tile = max(1, vmem_budget_bytes // per_row)

    sub = _sublane_multiple(x_dtype)
    tile = max(sub, (tile // sub) * sub)        # sublane aligned, >= one packed tile
    tile = min(tile, _row_tile_cap(gen, dim))

    rows_padded = ((rows + sub - 1) // sub) * sub
    tile = min(tile, rows_padded)               # don't tile past the data
    return tile


# ----------------------------------------------------------------------------
# Public wrapper
# ----------------------------------------------------------------------------
def qrmsnorm(x, weight=None, eps=1e-6, *, tile_rows=None,
             promote_affine_output=True,
             vmem_budget_bytes=None, vmem_limit_bytes=None):
    """RMSNorm over the last axis of x. weight: optional (dim,) parameter.

    promote_affine_output=True matches torch exactly (normed.type_as(x) *
    f32 weight -> promoted dtype). False keeps the output in x.dtype
    (production mixed-precision; halves HBM writes for bf16 activations).
    """
    orig_shape = x.shape
    dim = orig_shape[-1]
    rows = 1
    for s in orig_shape[:-1]:
        rows *= s
    x2d = x.reshape(rows, dim)

    gen, vmem_cap = _detect_tpu()
    auto_budget, auto_limit = _vmem_budget_and_limit(gen, vmem_cap)
    if vmem_budget_bytes is None:
        vmem_budget_bytes = auto_budget
    if vmem_limit_bytes is None:
        vmem_limit_bytes = auto_limit

    has_weight = weight is not None
    if has_weight:
        w2d = weight.reshape(1, dim).astype(jnp.float32)
        if promote_affine_output:
            out_dtype = jnp.promote_types(x.dtype, jnp.float32)   # torch-exact
        else:
            out_dtype = x.dtype                                    # keep dtype
    else:
        out_dtype = x.dtype

    if tile_rows is None:
        tile_rows = _pick_tile_rows(rows, dim, x.dtype, out_dtype,
                                    vmem_budget_bytes, gen)

    grid = (pl.cdiv(rows, tile_rows),)

    x_spec = pl.BlockSpec((tile_rows, dim), lambda i: (i, 0))
    o_spec = pl.BlockSpec((tile_rows, dim), lambda i: (i, 0))

    if has_weight:
        # Constant index_map -> block index never changes across the grid, so
        # Pallas keeps the tiny (1, dim) f32 weight resident (no per-step DMA).
        in_specs = [x_spec, pl.BlockSpec((1, dim), lambda i: (0, 0))]
        args = (x2d, w2d)
    else:
        in_specs = [x_spec]
        args = (x2d,)

    kernel = functools.partial(_qrmsnorm_kernel, eps=eps, has_weight=has_weight)

    def _call(dim_sem):
        return pl.pallas_call(
            kernel,
            out_shape=jax.ShapeDtypeStruct((rows, dim), out_dtype),
            grid_spec=pltpu.PrefetchScalarGridSpec(
                num_scalar_prefetch=0,
                grid=grid,
                in_specs=in_specs,
                out_specs=o_spec,
            ),
            compiler_params=pltpu.CompilerParams(
                dimension_semantics=dim_sem,
                vmem_limit_bytes=vmem_limit_bytes,
            ),
        )(*args)

    if gen >= 7:
        # Engage both v7x TensorCores: plain "parallel" doesn't change
        # codegen, only CORE_PARALLEL actually splits the grid across cores.
        try:
            out2d = _call((pltpu.CORE_PARALLEL,))
        except Exception:
            out2d = _call(("parallel",))
    else:
        out2d = _call(("parallel",))

    return out2d.reshape(orig_shape)


# ----------------------------------------------------------------------------
# Pure-JAX reference (torch semantics)
# ----------------------------------------------------------------------------
def qrmsnorm_ref(x, weight=None, eps=1e-6, promote_affine_output=True):
    xf = x.astype(jnp.float32)
    rms_scale = jax.lax.rsqrt(jnp.mean(xf * xf, axis=-1, keepdims=True) + eps)
    out = (xf * rms_scale).astype(x.dtype)
    if weight is not None:
        out = out * weight.astype(jnp.float32)
        if not promote_affine_output:
            out = out.astype(x.dtype)
    return out


if __name__ == "__main__":
    key = jax.random.PRNGKey(0)

    # Case 1: elementwise_affine=True (weight = ones, as torch init), f32.
    batch, seq, hidden = 2, 8, 32
    x = jax.random.normal(key, (batch, seq, hidden), dtype=jnp.float32)
    weight = jnp.ones((hidden,), dtype=jnp.float32)

    out = jax.block_until_ready(qrmsnorm(x, weight, eps=1e-6))
    ref = qrmsnorm_ref(x, weight, eps=1e-6)
    assert out.shape == x.shape, (out.shape, x.shape)
    assert out.dtype == ref.dtype, (out.dtype, ref.dtype)
    assert jnp.allclose(out, ref, atol=1e-5, rtol=1e-5), "mismatch (affine f32)"

    # Case 2: no affine weight, ragged leading dims (rows not multiple of 8).
    x2 = jax.random.normal(jax.random.PRNGKey(0), (3, 5, hidden), dtype=jnp.float32)
    out2 = jax.block_until_ready(qrmsnorm(x2, None, eps=1e-6))
    ref2 = qrmsnorm_ref(x2, None, eps=1e-6)
    assert out2.shape == x2.shape
    assert jnp.allclose(out2, ref2, atol=1e-5, rtol=1e-5), "mismatch (no affine)"

    # Case 3: bf16 activations, torch-exact promoted output (f32).
    xb = jax.random.normal(jax.random.PRNGKey(1), (batch, seq, hidden),
                           dtype=jnp.bfloat16)
    out3 = jax.block_until_ready(qrmsnorm(xb, weight, eps=1e-6,
                                          promote_affine_output=True))
    ref3 = qrmsnorm_ref(xb, weight, eps=1e-6, promote_affine_output=True)
    assert out3.dtype == ref3.dtype == jnp.float32
    assert jnp.allclose(out3, ref3, atol=1e-2, rtol=1e-2), "mismatch (bf16 promote)"

    # Case 4: bf16 activations, keep-activation-dtype output (halves HBM writes).
    out4 = jax.block_until_ready(qrmsnorm(xb, weight, eps=1e-6,
                                          promote_affine_output=False))
    ref4 = qrmsnorm_ref(xb, weight, eps=1e-6, promote_affine_output=False)
    assert out4.dtype == ref4.dtype == jnp.bfloat16
    assert jnp.allclose(out4.astype(jnp.float32), ref4.astype(jnp.float32),
                        atol=2e-2, rtol=2e-2), "mismatch (bf16 keep dtype)"

    print("KERNEL_OK")
</pallas_src>

<mosaic_0001>
module attributes {stable_mosaic.version = 11 : i64} {
  func.func @_qrmsnorm_kernel(%arg0: i32, %arg1: memref<16x32xf32, #tpu.memory_space<vmem>>, %arg2: memref<1x32xf32, #tpu.memory_space<vmem>>, %arg3: memref<16x32xf32, #tpu.memory_space<vmem>>) attributes {dimension_semantics = [#tpu.dimension_semantics<parallel>], iteration_bounds = array<i64: 1>, scalar_prefetch = 0 : i64, scratch_operands = 0 : i64, tpu.core_type = #tpu.core_type<tc>, window_params = [{transform_indices = @transform_0, window_bounds = array<i64: 16, 32>}, {pipeline_mode = #tpu.pipeline_mode<synchronous>, transform_indices = @transform_1, window_bounds = array<i64: 1, 32>}, {transform_indices = @transform_2, window_bounds = array<i64: 16, 32>}]} {
    %c0 = arith.constant 0 : index
    %c0_0 = arith.constant 0 : index
    %0 = vector.load %arg1[%c0, %c0_0] : memref<16x32xf32, #tpu.memory_space<vmem>>, vector<16x32xf32>
    %1 = arith.mulf %0, %0 : vector<16x32xf32>
    %cst = arith.constant dense<0.000000e+00> : vector<16xf32>
    %2 = vector.multi_reduction <add>, %1, %cst [1] : vector<16x32xf32> to vector<16xf32>
    %3 = vector.shape_cast %2 : vector<16xf32> to vector<16x1xf32>
    %cst_1 = arith.constant 3.200000e+01 : f32
    %4 = vector.broadcast %cst_1 : f32 to vector<16x1xf32>
    %5 = arith.divf %3, %4 : vector<16x1xf32>
    %cst_2 = arith.constant 9.99999997E-7 : f32
    %6 = vector.broadcast %cst_2 : f32 to vector<16x1xf32>
    %7 = arith.addf %5, %6 : vector<16x1xf32>
    %8 = math.rsqrt %7 : vector<16x1xf32>
    %9 = vector.broadcast %8 : vector<16x1xf32> to vector<16x32xf32>
    %10 = arith.mulf %0, %9 : vector<16x32xf32>
    %c0_3 = arith.constant 0 : index
    %c0_4 = arith.constant 0 : index
    %11 = vector.load %arg2[%c0_3, %c0_4] : memref<1x32xf32, #tpu.memory_space<vmem>>, vector<1x32xf32>
    %12 = vector.broadcast %11 : vector<1x32xf32> to vector<16x32xf32>
    %13 = arith.mulf %10, %12 : vector<16x32xf32>
    %c0_5 = arith.constant 0 : index
    %c0_6 = arith.constant 0 : index
    %14 = vector.load %arg3[%c0_5, %c0_6] : memref<16x32xf32, #tpu.memory_space<vmem>>, vector<16x32xf32>
    tpu.vector_store %arg3[%c0_5, %c0_6], %13 {strides = array<i32>} : memref<16x32xf32, #tpu.memory_space<vmem>>, vector<16x32xf32>,
    return
  }
  func.func @transform_0(%arg0: i32) -> (i32, i32) {
    %c0_i32 = arith.constant 0 : i32
    %c0_i32_0 = arith.constant 0 : i32
    return %arg0, %c0_i32 : i32, i32
  }
  func.func @transform_1(%arg0: i32) -> (i32, i32) {
    %c0_i32 = arith.constant 0 : i32
    %c0_i32_0 = arith.constant 0 : i32
    %c0_i32_1 = arith.constant 0 : i32
    return %c0_i32, %c0_i32_0 : i32, i32
  }
  func.func @transform_2(%arg0: i32) -> (i32, i32) {
    %c0_i32 = arith.constant 0 : i32
    %c0_i32_0 = arith.constant 0 : i32
    return %arg0, %c0_i32 : i32, i32
  }
}

</mosaic_0001>

<bundles_post_ra>
// kernel: tpu_custom_call.1
= control target key start
LH: loop header
LB: loop body
LE: loop exit
PB: predicated region body
PF: predicated region fallthrough
CT: control target
= control target key end

     0   :  { %7 = vsyncpa [#allocation3], 0  ;;  %s245_s0 = inlined_call_operand.hbm [shape: f32[16,32], index: 0, kind: input, shape index: {}]   ;;  %s246_s1 = inlined_call_operand.hbm [shape: f32[1,32], index: 1, kind: input, shape index: {}]   ;;  %s247_s2 = inlined_call_operand.hbm [shape: f32[16,32], index: 2, kind: output, shape index: {}]  }
   0x1   :  { %8 = vsyncpa [#allocation6], 0 }
   0x2   :  { %9 = vsyncpa [#allocation4], 0  ;;  %s14_s11 = sshll.u32 %s245_s0, 4  ;;  %s205_s12 = smov [#allocation2]   ;;  %s15_s11 = int_to_ptr.hbm [resolvable:$true] %s14_s11 }
   0x3   :  { %s16_s13 = sshll.u32 %s205_s12, 4  ;;  %s28_s16 = sshll.u32 %s246_s1, 4  ;;  %s17_s13 = int_to_ptr.vmem [resolvable:$true] %s16_s13  ;;  %s29_s16 = int_to_ptr.hbm [resolvable:$true] %s28_s16 }
   0x4   :  { %s206_s17 = smov 128   ;;  %s207_s18 = smov 8  }
   0x5   :  { %22 = dma.hbm_to_vmem [thread:$0]  %s15_s11, 256, %s17_s13, [#allocation3], %s206_s17, %s206_s17, %s207_s18  }
   0x6   :  { %s208_s19 = smov [#allocation5]  }
   0x7   :  { %s30_s20 = sshll.u32 %s208_s19, 4  ;;  %s31_s20 = int_to_ptr.vmem [resolvable:$true] %s30_s20 }
   0x8   :  { %33 = dma.hbm_to_vmem [thread:$0]  %s29_s16, 16, %s31_s20, [#allocation6]  }
   0x9   :  { %199 = dma.done.wait [#allocation3], 256  }
   0xa   :  { %200 = vsyncadd [#allocation3], 4294967040 }
   0xb   :  { %201 = dma.done.wait [#allocation6], 16  }
   0xc   :  { %202 = vsyncadd [#allocation6], 4294967280  ;;  %v42_v0 = vld [vmem:[#allocation2] sm:$0xff]  ;;  %vm46_vm0 = vcmask 261120   ;;  %v43_v2 = vld [vmem:[#allocation2 + $0x8] sm:$0xff]  ;;  %v209_v6 = vmov 32.0  }
   0xd   :  { %v44_v1 = vmul.f32 %v42_v0, %v42_v0  ;;  %v45_v4 = vmul.f32 %v43_v2, %v43_v2  ;;  %121 = vrcp.f32 %v209_v6  ;;  %v120_v27 = vld [vmem:[#allocation5] ss:$0 sm:$0xff]  ;;  %s210_s0 = smov [#allocation7]   ;;  %s100_s23 = sshll.u32 %s247_s2, 4  ;;  %s101_s23 = int_to_ptr.hbm [resolvable:$true] %s100_s23 }
   0xe   :  { %s98_s1 = sshll.u32 %s210_s0, 4  ;;  %s99_s1 = int_to_ptr.vmem [resolvable:$true] %s98_s1 }
   0xf   :  { %v47_v3 = vsel %vm46_vm0, %v44_v1, 0.0  ;;  %v50_v5 = vsel %vm46_vm0, %v45_v4, 0.0 }
  0x10   :  { %48 = vadd.xlane.f32.xlu0 %v47_v3 }
  0x13   :  { %v122_v7 = vpop.eup %121 }
  0x14   :  { %v54_v8 = vmul.f32 32.0, %v122_v7  ;;  %vm58_vm1 = vweird.f32 %v122_v7 }
  0x16   :  { %v55_v9 = vsub.f32 1.0, %v54_v8 }
  0x18   :  { %51 = vadd.xlane.f32.xlu0 %v50_v5  ;;  %v56_v10 = vmul.f32 %v122_v7, %v55_v9 }
  0x1a   :  { %v57_v11 = vadd.f32 %v122_v7, %v56_v10 }
  0x1c   :  { %v59_v12 = vsel %vm58_vm1, %v122_v7, %v57_v11 }
  0x83   :  { %v49_v13 = vpop.xlane.xlu0 %48 }
  0x84   :  { %v60_v14 = vmul.f32 %v59_v12, %v49_v13 }
  0x86   :  { %v62_v15 = vadd.f32 1e-06, %v60_v14 }
  0x88   :  { %123 = vrsqrt.f32 %v62_v15  ;;  %vm70_vm3 = vweird.f32 %v62_v15 }
  0x8b   :  { %v52_v16 = vpop.xlane.xlu0 %51 }
  0x8c   :  { %v61_v17 = vmul.f32 %v59_v12, %v52_v16 }
  0x8e   :  { %v124_v18 = vpop.eup %123  ;;  %v63_v19 = vadd.f32 1e-06, %v61_v17 }
  0x8f   :  { %v65_v20 = vmul.f32 %v124_v18, %v62_v15  ;;  %vm71_vm2 = vweird.f32 %v124_v18 }
  0x90   :  { %125 = vrsqrt.f32 %v63_v19  ;;  %vm72_vm4 = vmor %vm70_vm3, %vm71_vm2  ;;  %vm80_vm6 = vweird.f32 %v63_v19 }
  0x91   :  { %v66_v21 = vmul.f32 %v124_v18, %v65_v20 }
  0x93   :  { %v67_v22 = vmul.f32 0.5, %v66_v21 }
  0x95   :  { %v68_v23 = vsub.f32 1.5, %v67_v22 }
  0x96   :  { %v126_v24 = vpop.eup %125 }
  0x97   :  { %v69_v25 = vmul.f32 %v124_v18, %v68_v23  ;;  %v75_v26 = vmul.f32 %v126_v24, %v63_v19  ;;  %vm81_vm5 = vweird.f32 %v126_v24 }
  0x98   :  { %vm82_vm7 = vmor %vm80_vm6, %vm81_vm5 }
  0x99   :  { %v73_v28 = vsel %vm72_vm4, %v124_v18, %v69_v25  ;;  %v76_v29 = vmul.f32 %v126_v24, %v75_v26 }
  0x9a   :  { %v84_v30 = vmul.f32 %v73_v28, %v42_v0 }
  0x9b   :  { %v77_v31 = vmul.f32 0.5, %v76_v29 }
  0x9c   :  { %v90_v32 = vmul.f32 %v120_v27, %v84_v30 }
  0x9d   :  { %v78_v33 = vsub.f32 1.5, %v77_v31 }
  0x9e   :  { %92 = vst.msk [vmem:[#allocation7] sm:$0xff] %vm46_vm0, %v90_v32 }
  0x9f   :  { %v79_v34 = vmul.f32 %v126_v24, %v78_v33 }
  0xa1   :  { %v83_v35 = vsel %vm82_vm7, %v126_v24, %v79_v34 }
  0xa2   :  { %v85_v36 = vmul.f32 %v83_v35, %v43_v2 }
  0xa4   :  { %v91_v37 = vmul.f32 %v120_v27, %v85_v36 }
  0xa6   :  { %93 = vst.msk [vmem:[#allocation7 + $0x8] sm:$0xff] %vm46_vm0, %v91_v37 }
  0xa7   :  { %106 = dma.vmem_to_hbm [thread:$0]  %s99_s1, 256, %s101_s23, [#allocation4], %s206_s17, %s206_s17, %s207_s18  }
  0xa8   :  { %203 = dma.done.wait [#allocation4], 256  }
  0xa9   :  { %204 = vsyncadd [#allocation4], 4294967040 }
  0xaa   :  { %111 = vsyncpa [#allocation3], 1 }
  0xab   :  { %112 = vsyncpa [#allocation6], 1 }
  0xac   :  { %113 = vsyncpa [#allocation4], 1 }

</bundles_post_ra>
